<compile_context>
chip_gen: v7x
topology: tpu7x:2x2x1
jax: 0.10.0
libtpu: 0.0.40
codegen_flags: <defaults>
</compile_context>

<pallas_src>
import functools

import jax
import jax.numpy as jnp
from jax import lax
from jax.experimental import pallas as pl
from jax.experimental.pallas import tpu as pltpu


def _round_up(a: int, b: int) -> int:
    return ((a + b - 1) // b) * b


def _make_kernel(tm: int, sub: int):
    """Build the kernel for a static (tile, sub-chunk) configuration."""
    n_sub = tm // sub

    def kernel(x_ref, w1t_ref, b1_ref, w2c_ref, b2_ref, o_ref):
        # Hoist tiny resident params out of the sub-chunk loop.
        w1t = w1t_ref[...]          # (H, D)  matches x dtype (bf16 or f32)
        b1 = b1_ref[...]            # (H, 1)  f32, broadcasts across lanes
        w2c = w2c_ref[...]          # (H, 1)  f32
        b2 = b2_ref[0]              # f32 scalar from SMEM

        def compute(start):
            x_blk = x_ref[pl.ds(start, sub), :]          # (sub, D) native layout
            # h^T = W1^T @ x_blk^T : contract the last (feature) dim of both
            # operands so the batch stays on the 128-lane axis.  f32 MXU acc.
            h = lax.dot_general(
                w1t, x_blk, (((1,), (1,)), ((), ())),
                preferred_element_type=jnp.float32)      # (H, sub)
            h = jnp.maximum(h + b1, 0.0)                 # bias + ReLU (VPU, f32)
            # Output layer: VPU multiply + sublane reduce instead of an M=1
            # MXU matmul (keeps the MXU push/pop off the per-step tail).
            y = jnp.sum(h * w2c, axis=0, keepdims=True) + b2   # (1, sub)
            o_ref[:, pl.ds(start, sub)] = y.astype(o_ref.dtype)

        if n_sub == 1:
            compute(0)
        else:
            def body(j, carry):
                compute(pl.multiple_of(j * sub, sub))
                return carry
            lax.fori_loop(0, n_sub, body, 0, unroll=True)

    return kernel


@functools.partial(jax.jit, static_argnames=("tm",))
def shallow_relu_forward(x, w1, b1, w2, b2, *, tm=None):
    """ShallowReLUNetwork forward.

    x  : (N, D)  native layout (same as the PyTorch module input); f32 or bf16.
    w1 : (D, H), b1: (H,)   -- first Linear, stored as (in, out)
    w2 : (H, 1), b2: (1,)   -- output Linear, stored as (in, out)
    Returns (N, 1) in x.dtype.  Arbitrary N handled via partial boundary blocks
    (no wrapper-side padding or transpose passes over x).
    """
    N, D = x.shape
    H = w1.shape[1]
    out_dtype = x.dtype

    n128 = _round_up(N, 128)
    if tm is None:
        if n128 <= 128:
            tm = 128
        else:
            # >= 2 grid steps (v7x megacore), <= 8192 lanes per step to
            # amortize the ~0.35 us per-step overhead.
            steps = max(2, pl.cdiv(n128, 8192))
            tm = _round_up(pl.cdiv(n128, steps), 128)
    else:
        tm = _round_up(max(128, min(int(tm), n128)), 128)
    grid = (pl.cdiv(N, tm),)

    # In-kernel sub-chunk width: keep the (H, sub) f32 intermediate in vregs.
    sub = min(tm, 512)
    while tm % sub:
        sub -= 128

    # Tiny resident parameters (constant block index => DMA'd once, stay in VMEM).
    w1t = w1.T.astype(x.dtype)                   # (H, D) matches the x stream dtype
    b1c = b1.reshape(H, 1).astype(jnp.float32)   # column: broadcasts across lanes
    w2c = w2.reshape(H, 1).astype(jnp.float32)   # column for VPU mul + sublane sum
    b2s = b2.reshape(1).astype(jnp.float32)      # SMEM scalar

    out_t = pl.pallas_call(
        _make_kernel(tm, sub),
        out_shape=jax.ShapeDtypeStruct((1, N), out_dtype),
        grid_spec=pltpu.PrefetchScalarGridSpec(
            num_scalar_prefetch=0,
            grid=grid,
            in_specs=[
                pl.BlockSpec((tm, D), lambda i: (i, 0)),   # native-layout x tile
                pl.BlockSpec((H, D), lambda i: (0, 0)),    # W1^T (resident)
                pl.BlockSpec((H, 1), lambda i: (0, 0)),    # b1 column (resident)
                pl.BlockSpec((H, 1), lambda i: (0, 0)),    # w2 column (resident)
                pl.BlockSpec(memory_space=pltpu.MemorySpace.SMEM),  # b2 scalar
            ],
            out_specs=pl.BlockSpec((1, tm), lambda i: (0, i)),  # lane-dense y^T
        ),
        compiler_params=pltpu.CompilerParams(
            dimension_semantics=("parallel",),   # megacore shards the batch axis
        ),
    )(x, w1t, b1c, w2c, b2s)

    # (1, N) -> (N, 1): same flat order, trivial reshape.
    return out_t.reshape(N, 1)


def reference_forward(x, w1, b1, w2, b2):
    h = jnp.maximum(x @ w1 + b1[None, :], 0.0)
    return h @ w2 + b2[None, :]


if __name__ == "__main__":
    # Module hyper-parameters: input_dim=4, width=32.  Batch large enough to
    # exercise a 2-step grid (pipelining / megacore) while staying tiny.
    D, H = 4, 32
    N = 1024

    key = jax.random.PRNGKey(0)
    kx, kw1, kb1, kw2, kb2 = jax.random.split(key, 5)

    # nn.Linear-style init: uniform(-1/sqrt(fan_in), +1/sqrt(fan_in)).
    bound1 = 1.0 / jnp.sqrt(D)
    bound2 = 1.0 / jnp.sqrt(H)
    w1 = jax.random.uniform(kw1, (D, H), jnp.float32, -bound1, bound1)
    b1 = jax.random.uniform(kb1, (H,), jnp.float32, -bound1, bound1)
    w2 = jax.random.uniform(kw2, (H, 1), jnp.float32, -bound2, bound2)
    b2 = jax.random.uniform(kb2, (1,), jnp.float32, -bound2, bound2)
    x = jax.random.normal(kx, (N, D), jnp.float32)

    ref = reference_forward(x, w1, b1, w2, b2)

    # f32 path (tm=512 -> 2 grid steps).
    out = jax.block_until_ready(shallow_relu_forward(x, w1, b1, w2, b2))
    assert out.shape == (N, 1)
    assert jnp.allclose(out, ref, atol=1e-4, rtol=1e-4), "f32 kernel mismatch"

    # Ragged batch (exercises the partial-boundary-block path; no padding pass).
    n_odd = 1000
    out_odd = jax.block_until_ready(
        shallow_relu_forward(x[:n_odd], w1, b1, w2, b2))
    assert out_odd.shape == (n_odd, 1)
    assert jnp.allclose(out_odd, ref[:n_odd], atol=1e-4, rtol=1e-4), \
        "ragged-batch kernel mismatch"

    # Caller-provided bf16 x (halves the dominant HBM stream; f32 MXU
    # accumulation and f32 bias/ReLU epilogue inside the kernel).
    out_bf16 = jax.block_until_ready(
        shallow_relu_forward(x.astype(jnp.bfloat16), w1, b1, w2, b2))
    assert out_bf16.shape == (N, 1)
    assert jnp.allclose(out_bf16.astype(jnp.float32), ref,
                        atol=1e-1, rtol=1e-1), "bf16 kernel mismatch"

    print("KERNEL_OK")
</pallas_src>

<mosaic_0001>
module attributes {stable_mosaic.version = 11 : i64} {
  func.func @kernel(%arg0: i32, %arg1: memref<512x4xf32, #tpu.memory_space<vmem>>, %arg2: memref<32x4xf32, #tpu.memory_space<vmem>>, %arg3: memref<32x1xf32, #tpu.memory_space<vmem>>, %arg4: memref<32x1xf32, #tpu.memory_space<vmem>>, %arg5: memref<1xf32, #tpu.memory_space<smem>>, %arg6: memref<1x512xf32, #tpu.memory_space<vmem>>) attributes {dimension_semantics = [#tpu.dimension_semantics<parallel>], iteration_bounds = array<i64: 2>, scalar_prefetch = 0 : i64, scratch_operands = 0 : i64, tpu.core_type = #tpu.core_type<tc>, window_params = [{transform_indices = @transform_0, window_bounds = array<i64: 512, 4>}, {pipeline_mode = #tpu.pipeline_mode<synchronous>, transform_indices = @transform_1, window_bounds = array<i64: 32, 4>}, {pipeline_mode = #tpu.pipeline_mode<synchronous>, transform_indices = @transform_2, window_bounds = array<i64: 32, 1>}, {pipeline_mode = #tpu.pipeline_mode<synchronous>, transform_indices = @transform_3, window_bounds = array<i64: 32, 1>}, {transform_indices = @transform_4, window_bounds = array<i64: 1>}, {transform_indices = @transform_5, window_bounds = array<i64: 1, 512>}]} {
    %c0 = arith.constant 0 : index
    %c0_0 = arith.constant 0 : index
    %0 = vector.load %arg2[%c0, %c0_0] : memref<32x4xf32, #tpu.memory_space<vmem>>, vector<32x4xf32>
    %c0_1 = arith.constant 0 : index
    %c0_2 = arith.constant 0 : index
    %1 = vector.load %arg3[%c0_1, %c0_2] : memref<32x1xf32, #tpu.memory_space<vmem>>, vector<32x1xf32>
    %c0_3 = arith.constant 0 : index
    %c0_4 = arith.constant 0 : index
    %2 = vector.load %arg4[%c0_3, %c0_4] : memref<32x1xf32, #tpu.memory_space<vmem>>, vector<32x1xf32>
    %c0_5 = arith.constant 0 : index
    %3 = memref.load %arg5[%c0_5] : memref<1xf32, #tpu.memory_space<smem>>
    %c0_6 = arith.constant 0 : index
    %c0_7 = arith.constant 0 : index
    %4 = vector.load %arg1[%c0_6, %c0_7] : memref<512x4xf32, #tpu.memory_space<vmem>>, vector<512x4xf32>
    %cst = arith.constant dense<0.000000e+00> : vector<32x512xf32>
    %5 = tpu.matmul %0, %4, %cst {dimension_numbers = #tpu.dot_dimension_numbers<[1], [1], [0], [0], [0, 0, 1, 0], [], []>} : vector<32x4xf32>, vector<512x4xf32>, vector<32x512xf32> -> vector<32x512xf32>
    %6 = vector.broadcast %1 : vector<32x1xf32> to vector<32x512xf32>
    %7 = arith.addf %5, %6 : vector<32x512xf32>
    %cst_8 = arith.constant 0.000000e+00 : f32
    %8 = vector.broadcast %cst_8 : f32 to vector<32x512xf32>
    %9 = arith.maximumf %7, %8 : vector<32x512xf32>
    %10 = vector.broadcast %2 : vector<32x1xf32> to vector<32x512xf32>
    %11 = arith.mulf %9, %10 : vector<32x512xf32>
    %cst_9 = arith.constant dense<0.000000e+00> : vector<512xf32>
    %12 = vector.multi_reduction <add>, %11, %cst_9 [0] : vector<32x512xf32> to vector<512xf32>
    %13 = vector.shape_cast %12 : vector<512xf32> to vector<1x512xf32>
    %14 = vector.broadcast %3 : f32 to vector<1x512xf32>
    %15 = arith.addf %13, %14 : vector<1x512xf32>
    %c0_10 = arith.constant 0 : index
    %c0_11 = arith.constant 0 : index
    %16 = vector.load %arg6[%c0_10, %c0_11] : memref<1x512xf32, #tpu.memory_space<vmem>>, vector<1x512xf32>
    tpu.vector_store %arg6[%c0_10, %c0_11], %15 {strides = array<i32>} : memref<1x512xf32, #tpu.memory_space<vmem>>, vector<1x512xf32>,
    return
  }
  func.func @transform_0(%arg0: i32) -> (i32, i32) {
    %c0_i32 = arith.constant 0 : i32
    %c0_i32_0 = arith.constant 0 : i32
    return %arg0, %c0_i32 : i32, i32
  }
  func.func @transform_1(%arg0: i32) -> (i32, i32) {
    %c0_i32 = arith.constant 0 : i32
    %c0_i32_0 = arith.constant 0 : i32
    %c0_i32_1 = arith.constant 0 : i32
    return %c0_i32, %c0_i32_0 : i32, i32
  }
  func.func @transform_2(%arg0: i32) -> (i32, i32) {
    %c0_i32 = arith.constant 0 : i32
    %c0_i32_0 = arith.constant 0 : i32
    %c0_i32_1 = arith.constant 0 : i32
    return %c0_i32, %c0_i32_0 : i32, i32
  }
  func.func @transform_3(%arg0: i32) -> (i32, i32) {
    %c0_i32 = arith.constant 0 : i32
    %c0_i32_0 = arith.constant 0 : i32
    %c0_i32_1 = arith.constant 0 : i32
    return %c0_i32, %c0_i32_0 : i32, i32
  }
  func.func @transform_4(%arg0: i32) -> i32 {
    %c0_i32 = arith.constant 0 : i32
    %c0_i32_0 = arith.constant 0 : i32
    return %c0_i32 : i32
  }
  func.func @transform_5(%arg0: i32) -> (i32, i32) {
    %c0_i32 = arith.constant 0 : i32
    %c0_i32_0 = arith.constant 0 : i32
    return %c0_i32, %arg0 : i32, i32
  }
}

</mosaic_0001>

<bundles_post_ra>
// kernel: shallow_relu_forward.1
= control target key start
LH: loop header
LB: loop body
LE: loop exit
PB: predicated region body
PF: predicated region fallthrough
CT: control target
= control target key end

     0   :  { %s1605_s0 = inlined_call_operand.vmem [shape: f32[1024,4], index: 0, kind: input, shape index: {}]   ;;  %s1606_s1 = inlined_call_operand.vmem [shape: f32[32,4], index: 1, kind: input, shape index: {}]   ;;  %s1607_s2 = inlined_call_operand.vmem [shape: f32[32,1], index: 2, kind: input, shape index: {}]   ;;  %s1608_s3 = inlined_call_operand.vmem [shape: f32[32,1], index: 3, kind: input, shape index: {}]   ;;  %s1609_s4 = inlined_call_operand.<no memory space> [shape: f32[1], index: 4, kind: input, shape index: {}]   ;;  %s1610_s5 = inlined_call_operand.hbm [shape: f32[1,1024], index: 5, kind: output, shape index: {}]  }
   0x1   :  { %10 = sst [smem:[#allocation2]] %s1609_s4 }
   0x2   :  { %11 = vsyncpa [#allocation4], 0 }
   0x3   :  { %13 = vsyncpa [#allocation4 + $0x1], 0  ;;  %s1312_s20 = smov 0   ;;  %s1314_s21 = smov 0  }
   0x4   :  { %s1316_s22 = smov 0   ;;  %s1318_s23 = smov 0  }
   0x5 LB: > { %s907_s4 = sadd.s32 4294967295, %s1274_s23   ;;  %s908_s24 = sadd.s32 4294967294, %s1274_s23   ;;  %s1274_s23 = sphi %s1318_s23, %s1618_s23   ;;  %s1270_s22 = sphi %s1316_s22, %s1617_s22   ;;  %s1266_s21 = sphi %s1314_s21, %s1616_s21   ;;  %s1262_s20 = sphi %s1312_s20, %s1615_s20  }
   0x6   : > { %s1335_s25 = sadd.s32 1, %s1274_s23   ;;  %s136_s26 = sadd.s32 1, %s1270_s22 }
   0x7   : > { %s133_s27 = ssub.s32 %s1274_s23, %s1335_s25  ;;  %p146_p0 = scmp.ne.s32.totalorder %s1270_s22, %s1266_s21 }
   0x8   : > { %p134_p1 = scmp.eq.s32.totalorder %s133_s27, 0  ;;  %p147_p2 = scmp.eq.s32.totalorder %s907_s4, 1 }
   0x9   : > { %p152_p3 = scmp.ne.s32.totalorder %s1266_s21, %s1262_s20  ;;  %p153_p4 = scmp.eq.s32.totalorder %s908_s24, 1 }
   0xa   : > { %s1345_s28 = scalar_select %p134_p1, %s1270_s22, %s136_s26  }
   0xb   : > { %p1347_p5 = por %p147_p2, %p146_p0  ;;  %p1351_p6 = por %p153_p4, %p152_p3 }
   0xc   : > { %p911_p7 = scmp.ge.s32.totalorder %s1274_s23, 1  ;;  %p192_p8 = scmp.lt.s32.totalorder %s1274_s23, 3 }
   0xe   : > { %p193_p9 = pnand %p911_p7, %p192_p8 }
   0xf   : > { %s1357_s6 = sshll.u32 (!%p193_p9), %s907_s4, 6  ;;  %vm324_vm0 = vcmask (!%p193_p9), 31744   ;;  %v1362_v0 = vld [vmem:[%s1606_s1] sm:$0xff] (!%p193_p9)  ;;  %v1276_v2 = vmov (!%p193_p9), 0   ;;  %v233_v3 = vld [vmem:[%s1607_s2 + $0x10] sm:$0xff] (!%p193_p9)  ;;  %v232_v4 = vld [vmem:[%s1607_s2 + $0x8] sm:$0xff] (!%p193_p9) }
  0x10   : > { %196 = sbr.rel (%p193_p9) target bundleno = 365 (0x16d), region = 40  ;;  %p221_p10 = scmp.lt.s32.totalorder (!%p193_p9), %s1357_s6, 127  ;;  %1025 = vmatprep.mubr.msk.f32.mxu0 (!%p193_p9), %vm324_vm0, %v1362_v0  ;;  %1065 = vmatprep.mubr.msk.f32.mxu1 (!%p193_p9), %vm324_vm0, %v1362_v0  ;;  %v231_v1 = vld [vmem:[%s1607_s2] sm:$0xff] (!%p193_p9)  ;;  %v234_v5 = vld [vmem:[%s1607_s2 + $0x18] sm:$0xff] (!%p193_p9)  ;;  %vm1389_vm1 = vmpackc.low (!%p193_p9), %vm324_vm0, %vm324_vm0 }
  0x11   : > { %1210 = vset.pattern.permute.xlu0 (!%p193_p9), %v1276_v2  ;;  %1211 = vset.pattern.permute.xlu1 (!%p193_p9), %v1276_v2  ;;  %v235_v10 = vld [vmem:[%s1608_s3] sm:$0xff] (!%p193_p9)  ;;  %v236_v26 = vld [vmem:[%s1608_s3 + $0x8] sm:$0xff] (!%p193_p9)  ;;  %v237_v27 = vld [vmem:[%s1608_s3 + $0x10] sm:$0xff] (!%p193_p9)  ;;  %s239_s19 = sld [smem:[#allocation2]] (!%p193_p9)  ;;  %s217_s4 = sand.u32 (!%p193_p9), 1, %s1266_s21  }
  0x12   : > { %306 = vperm.xlu0 (!%p193_p9), %1210, %v231_v1   ;;  %316 = vperm.xlu1 (!%p193_p9), %1211, %v233_v3   ;;  %v238_v37 = vld [vmem:[%s1608_s3 + $0x18] sm:$0xff] (!%p193_p9)  ;;  %s1563_s9 = scalar_lea.hbm (!%p193_p9), %s1610_s5, %s1357_s6  ;;  %s835_s10 = scalar_lea.sflag (!%p193_p9), [#allocation4], %s217_s4 }
  0x13   : > { %s1278_s12 = smov (!%p193_p9), [#allocation3]  }
  0x16   : > { %311 = vperm.xlu0 (!%p193_p9), %1210, %v232_v4   ;;  %321 = vperm.xlu1 (!%p193_p9), %1211, %v234_v5  }
  0x17   : > { %s222_s13 = scalar_select %p221_p10, %s1357_s6, 127 }
  0x19   : > { %s914_s18 = sshll.u32 %s222_s13, 3  ;;  %s1216_s13 = sshll.u32 %s1278_s12, 4  ;;  %s1217_s13 = int_to_ptr.vmem [resolvable:$false] %s1216_s13 }
  0x1a   : > { %s1385_s24 = scalar_lea.vmem %s1605_s0, %s914_s18  ;;  %725 = vperm.xlu0 %1210, %v235_v10   ;;  %730 = vperm.xlu1 %1211, %v236_v26   ;;  %s1218_s14 = scalar_lea.vmem %s1217_s13, 128 }
  0x1b   : > { %v256_v7 = vld [vmem:[%s1385_s24 + $0x80] sm:$0xff]  ;;  %v257_v8 = vld [vmem:[%s1385_s24 + $0x88] sm:$0xff]  ;;  %v258_v19 = vld [vmem:[%s1385_s24 + $0x90] sm:$0xff] }
  0x1c   : > { %v288_v9 = vld [vmem:[%s1385_s24 + $0x180] sm:$0xff]  ;;  %v1073_v11 = vpack.c.bf16 %v257_v8, %v256_v7  ;;  %v289_v12 = vld [vmem:[%s1385_s24 + $0x188] sm:$0xff]  ;;  %v259_v21 = vld [vmem:[%s1385_s24 + $0x98] sm:$0xff] }
  0x1d   : > { %v240_v13 = vld [vmem:[%s1385_s24] sm:$0xff]  ;;  %v241_v14 = vld [vmem:[%s1385_s24 + $0x8] sm:$0xff]  ;;  %v1121_v15 = vpack.c.bf16 %v289_v12, %v288_v9  ;;  %v290_v22 = vld [vmem:[%s1385_s24 + $0x190] sm:$0xff]  ;;  %v1079_v24 = vpack.c.bf16 %v259_v21, %v258_v19 }
  0x1e   : > { %v1076_v16 = vpack.c.bf16 %v241_v14, %v240_v13  ;;  %v272_v17 = vld [vmem:[%s1385_s24 + $0x100] sm:$0xff]  ;;  %v273_v18 = vld [vmem:[%s1385_s24 + $0x108] sm:$0xff]  ;;  %1075 = vmatprep.subr.msk.bf16.mxu0 %vm1389_vm1, %v1073_v11  ;;  %v291_v23 = vld [vmem:[%s1385_s24 + $0x198] sm:$0xff]  ;;  %735 = vperm.xlu0 %1210, %v237_v27  }
  0x1f   : > { %v1124_v20 = vpack.c.bf16 %v273_v18, %v272_v17  ;;  %1123 = vmatprep.subr.msk.bf16.mxu1 %vm1389_vm1, %v1121_v15  ;;  %v1127_v25 = vpack.c.bf16 %v291_v23, %v290_v22  ;;  %v242_v28 = vld [vmem:[%s1385_s24 + $0x10] sm:$0xff]  ;;  %v243_v29 = vld [vmem:[%s1385_s24 + $0x18] sm:$0xff]  ;;  %v260_v32 = vld [vmem:[%s1385_s24 + $0xa0] sm:$0xff]  ;;  %740 = vperm.xlu1 %1211, %v238_v37  }
  0x20   : > { %1078 = vmatpush3.bf16.xpose.msk.msra.mxu0 %vm1389_vm1, %v1076_v16  ;;  %v274_v30 = vld [vmem:[%s1385_s24 + $0x110] sm:$0xff]  ;;  %v275_v31 = vld [vmem:[%s1385_s24 + $0x118] sm:$0xff]  ;;  %v261_v33 = vld [vmem:[%s1385_s24 + $0xa8] sm:$0xff]  ;;  %v1082_v36 = vpack.c.bf16 %v243_v29, %v242_v28 }
  0x21   : > { %1126 = vmatpush3.bf16.xpose.msk.msra.mxu1 %vm1389_vm1, %v1124_v20  ;;  %1081 = vmatprep.subr.msk.bf16.mxu0 %vm1389_vm1, %v1079_v24  ;;  %v292_v34 = vld [vmem:[%s1385_s24 + $0x1a0] sm:$0xff]  ;;  %v293_v35 = vld [vmem:[%s1385_s24 + $0x1a8] sm:$0xff]  ;;  %v1130_v38 = vpack.c.bf16 %v275_v31, %v274_v30  ;;  %v1085_v39 = vpack.c.bf16 %v261_v33, %v260_v32  ;;  %v262_v45 = vld [vmem:[%s1385_s24 + $0xb0] sm:$0xff] }
  0x22   : > { %1129 = vmatprep.subr.msk.bf16.mxu1 %vm1389_vm1, %v1127_v25  ;;  %v1133_v40 = vpack.c.bf16 %v293_v35, %v292_v34  ;;  %v244_v41 = vld [vmem:[%s1385_s24 + $0x20] sm:$0xff]  ;;  %v245_v42 = vld [vmem:[%s1385_s24 + $0x28] sm:$0xff]  ;;  %v263_v46 = vld [vmem:[%s1385_s24 + $0xb8] sm:$0xff] }
  0x23   : > { %v276_v43 = vld [vmem:[%s1385_s24 + $0x120] sm:$0xff]  ;;  %v277_v44 = vld [vmem:[%s1385_s24 + $0x128] sm:$0xff]  ;;  %v294_v47 = vld [vmem:[%s1385_s24 + $0x1b0] sm:$0xff]  ;;  %v1088_v49 = vpack.c.bf16 %v245_v42, %v244_v41  ;;  %v1091_v51 = vpack.c.bf16 %v263_v46, %v262_v45 }
  0x24   : > { %v295_v48 = vld [vmem:[%s1385_s24 + $0x1b8] sm:$0xff]  ;;  %v1136_v50 = vpack.c.bf16 %v277_v44, %v276_v43  ;;  %v246_v53 = vld [vmem:[%s1385_s24 + $0x30] sm:$0xff]  ;;  %v264_v57 = vld [vmem:[%s1385_s24 + $0xc0] sm:$0xff] }
  0x25   : > { %v1139_v52 = vpack.c.bf16 %v295_v48, %v294_v47  ;;  %v247_v54 = vld [vmem:[%s1385_s24 + $0x38] sm:$0xff]  ;;  %v278_v55 = vld [vmem:[%s1385_s24 + $0x130] sm:$0xff]  ;;  %v265_v58 = vld [vmem:[%s1385_s24 + $0xc8] sm:$0xff] }
  0x26   : > { %v279_v56 = vld [vmem:[%s1385_s24 + $0x138] sm:$0xff]  ;;  %v296_v59 = vld [vmem:[%s1385_s24 + $0x1c0] sm:$0xff]  ;;  %v297_v60 = vld [vmem:[%s1385_s24 + $0x1c8] sm:$0xff]  ;;  %v1094_v61 = vpack.c.bf16 %v247_v54, %v246_v53  ;;  %v1097_v63 = vpack.c.bf16 %v265_v58, %v264_v57 }
  0x27   : > { %v1142_v62 = vpack.c.bf16 %v279_v56, %v278_v55  ;;  %v1145_v1 = vpack.c.bf16 %v297_v60, %v296_v59  ;;  %v248_v2 = vld [vmem:[%s1385_s24 + $0x40] sm:$0xff]  ;;  %v249_v3 = vld [vmem:[%s1385_s24 + $0x48] sm:$0xff]  ;;  %v266_v7 = vld [vmem:[%s1385_s24 + $0xd0] sm:$0xff] }
  0x28   : > { %1084 = vmatpush3.bf16.xpose.msk.msra.mxu0 %vm1389_vm1, %v1082_v36  ;;  %v280_v4 = vld [vmem:[%s1385_s24 + $0x140] sm:$0xff]  ;;  %v281_v5 = vld [vmem:[%s1385_s24 + $0x148] sm:$0xff]  ;;  %v267_v8 = vld [vmem:[%s1385_s24 + $0xd8] sm:$0xff]  ;;  %v1100_v11 = vpack.c.bf16 %v249_v3, %v248_v2 }
  0x29   : > { %1132 = vmatpush3.bf16.xpose.msk.msra.mxu1 %vm1389_vm1, %v1130_v38  ;;  %1087 = vmatprep.subr.msk.bf16.mxu0 %vm1389_vm1, %v1085_v39  ;;  %v298_v9 = vld [vmem:[%s1385_s24 + $0x1d0] sm:$0xff]  ;;  %v299_v10 = vld [vmem:[%s1385_s24 + $0x1d8] sm:$0xff]  ;;  %v1148_v12 = vpack.c.bf16 %v281_v5, %v280_v4  ;;  %v1103_v13 = vpack.c.bf16 %v267_v8, %v266_v7  ;;  %v268_v19 = vld [vmem:[%s1385_s24 + $0xe0] sm:$0xff] }
  0x2a   : > { %1135 = vmatprep.subr.msk.bf16.mxu1 %vm1389_vm1, %v1133_v40  ;;  %v1151_v14 = vpack.c.bf16 %v299_v10, %v298_v9  ;;  %v250_v15 = vld [vmem:[%s1385_s24 + $0x50] sm:$0xff]  ;;  %v251_v16 = vld [vmem:[%s1385_s24 + $0x58] sm:$0xff]  ;;  %v269_v20 = vld [vmem:[%s1385_s24 + $0xe8] sm:$0xff] }
  0x2b   : > { %v282_v17 = vld [vmem:[%s1385_s24 + $0x150] sm:$0xff]  ;;  %v283_v18 = vld [vmem:[%s1385_s24 + $0x158] sm:$0xff]  ;;  %v300_v21 = vld [vmem:[%s1385_s24 + $0x1e0] sm:$0xff]  ;;  %v1106_v23 = vpack.c.bf16 %v251_v16, %v250_v15  ;;  %v1109_v25 = vpack.c.bf16 %v269_v20, %v268_v19 }
  0x2c   : > { %v301_v22 = vld [vmem:[%s1385_s24 + $0x1e8] sm:$0xff]  ;;  %v1154_v24 = vpack.c.bf16 %v283_v18, %v282_v17  ;;  %v252_v27 = vld [vmem:[%s1385_s24 + $0x60] sm:$0xff]  ;;  %v270_v31 = vld [vmem:[%s1385_s24 + $0xf0] sm:$0xff] }
  0x2d   : > { %v1157_v26 = vpack.c.bf16 %v301_v22, %v300_v21  ;;  %v253_v28 = vld [vmem:[%s1385_s24 + $0x68] sm:$0xff]  ;;  %v284_v29 = vld [vmem:[%s1385_s24 + $0x160] sm:$0xff]  ;;  %v271_v32 = vld [vmem:[%s1385_s24 + $0xf8] sm:$0xff] }
  0x2e   : > { %v285_v30 = vld [vmem:[%s1385_s24 + $0x168] sm:$0xff]  ;;  %v302_v33 = vld [vmem:[%s1385_s24 + $0x1f0] sm:$0xff]  ;;  %v303_v34 = vld [vmem:[%s1385_s24 + $0x1f8] sm:$0xff]  ;;  %v1112_v35 = vpack.c.bf16 %v253_v28, %v252_v27  ;;  %v1115_v37 = vpack.c.bf16 %v271_v32, %v270_v31 }
  0x2f   : > { %v1160_v36 = vpack.c.bf16 %v285_v30, %v284_v29  ;;  %v1163_v38 = vpack.c.bf16 %v303_v34, %v302_v33  ;;  %v254_v39 = vld [vmem:[%s1385_s24 + $0x70] sm:$0xff]  ;;  %v255_v40 = vld [vmem:[%s1385_s24 + $0x78] sm:$0xff]  ;;  %v228_v45 = vld [vmem:[%s1606_s1 + $0x8] sm:$0xff] }
  0x30   : > { %1090 = vmatpush3.bf16.xpose.msk.msra.mxu0 %vm1389_vm1, %v1088_v49  ;;  %v286_v41 = vld [vmem:[%s1385_s24 + $0x170] sm:$0xff]  ;;  %v287_v42 = vld [vmem:[%s1385_s24 + $0x178] sm:$0xff]  ;;  %v1118_v43 = vpack.c.bf16 %v255_v40, %v254_v39  ;;  %s912_s24 = sshll.u32 %s217_s4, 2 }
  0x31   : > { %1138 = vmatpush3.bf16.xpose.msk.msra.mxu1 %vm1389_vm1, %v1136_v50  ;;  %1093 = vmatprep.subr.msk.bf16.mxu0 %vm1389_vm1, %v1091_v51  ;;  %v1166_v44 = vpack.c.bf16 %v287_v42, %v286_v41  ;;  %v229_v46 = vld [vmem:[%s1606_s1 + $0x10] sm:$0xff]  ;;  %s219_s26 = scalar_lea.vmem [#allocation3], %s912_s24 }
  0x32   : > { %1141 = vmatprep.subr.msk.bf16.mxu1 %vm1389_vm1, %v1139_v52  ;;  %s849_s27 = sshll.u32 %s219_s26, 4  ;;  %s1565_s27 = int_to_ptr.vmem [resolvable:$true] %s849_s27 }
  0x33   : > { %s1212_s11 = scalar_lea.vmem %s1565_s27, 64  ;;  %p1219_p0 = scmp.lt.s32.totalorder %s1565_s27, %s1217_s13 }
  0x34   : > { %p1213_p11 = scmp.ne.s32.totalorder %s1565_s27, %s1212_s11  ;;  %p1220_p1 = scmp.lt.s32.totalorder %s1218_s14, %s1212_s11 }
  0x36   : > { %p1214_p12 = pnand %p1213_p11, %p1347_p5  ;;  %p1221_p2 = por %p1220_p1, %p1219_p0 }
  0x38   : > { %1096 = vmatpush3.bf16.xpose.msk.msra.mxu0 %vm1389_vm1, %v1094_v61  ;;  %p1215_p13 = pneg %p1214_p12 }
  0x39   : > { %1144 = vmatpush3.bf16.xpose.msk.msra.mxu1 %vm1389_vm1, %v1142_v62  ;;  %1099 = vmatprep.subr.msk.bf16.mxu0 %vm1389_vm1, %v1097_v63 }
  0x3a   : > { %1147 = vmatprep.subr.msk.bf16.mxu1 %vm1389_vm1, %v1145_v1  ;;  %p1222_p3 = pnand %p1221_p2, %p1215_p13 }
  0x40   : > { %1102 = vmatpush3.bf16.xpose.msk.msra.mxu0 %vm1389_vm1, %v1100_v11 }
  0x41   : > { %1150 = vmatpush3.bf16.xpose.msk.msra.mxu1 %vm1389_vm1, %v1148_v12  ;;  %1105 = vmatprep.subr.msk.bf16.mxu0 %vm1389_vm1, %v1103_v13 }
  0x42   : > { %1153 = vmatprep.subr.msk.bf16.mxu1 %vm1389_vm1, %v1151_v14 }
  0x48   : > { %1108 = vmatpush3.bf16.xpose.msk.msra.mxu0 %vm1389_vm1, %v1106_v23 }
  0x49   : > { %1156 = vmatpush3.bf16.xpose.msk.msra.mxu1 %vm1389_vm1, %v1154_v24  ;;  %1111 = vmatprep.subr.msk.bf16.mxu0 %vm1389_vm1, %v1109_v25 }
  0x4a   : > { %1159 = vmatprep.subr.msk.bf16.mxu1 %vm1389_vm1, %v1157_v26 }
  0x50   : > { %1114 = vmatpush3.bf16.xpose.msk.msra.mxu0 %vm1389_vm1, %v1112_v35 }
  0x51   : > { %1162 = vmatpush3.bf16.xpose.msk.msra.mxu1 %vm1389_vm1, %v1160_v36  ;;  %1117 = vmatprep.subr.msk.bf16.mxu0 %vm1389_vm1, %v1115_v37 }
  0x52   : > { %1165 = vmatprep.subr.msk.bf16.mxu1 %vm1389_vm1, %v1163_v38 }
  0x58   : > { %1120 = vmatpush3.bf16.xpose.msk.msra.mxu0 %vm1389_vm1, %v1118_v43 }
  0x59   : > { %1168 = vmatpush3.bf16.xpose.msk.msra.mxu1 %vm1389_vm1, %v1166_v44 }
  0x5f   : > { %1026 = vmatmul.mubr.msk.f32.vlgmr.msra.gmra.mrb[0].mxu0 %vm324_vm0, %v1362_v0 }
  0x60   : > { %1066 = vmatmul.mubr.msk.f32.vlgmr.msra.gmra.mrb[0].mxu1 %vm324_vm0, %v1362_v0  ;;  %1027 = vmatprep.mubr.msk.f32.mxu0 %vm324_vm0, %v228_v45  ;;  %v230_v0 = vld [vmem:[%s1606_s1 + $0x18] sm:$0xff] }
  0x61   : > { %1067 = vmatprep.mubr.msk.f32.mxu1 %vm324_vm0, %v228_v45 }
  0x63   : > { %1028 = vmatmul.mubr.msk.f32.gmra.mrb[2].mxu0 %vm324_vm0, %v228_v45 }
  0x64   : > { %1068 = vmatmul.mubr.msk.f32.gmra.mrb[2].mxu1 %vm324_vm0, %v228_v45  ;;  %1029 = vmatprep.mubr.msk.f32.mxu0 %vm324_vm0, %v229_v46 }
  0x65   : > { %1069 = vmatprep.mubr.msk.f32.mxu1 %vm324_vm0, %v229_v46 }
  0x67   : > { %1030 = vmatmul.mubr.msk.f32.gmra.mrb[4].mxu0 %vm324_vm0, %v229_v46 }
  0x68   : > { %1070 = vmatmul.mubr.msk.f32.gmra.mrb[4].mxu1 %vm324_vm0, %v229_v46  ;;  %1031 = vmatprep.mubr.msk.f32.mxu0 %vm324_vm0, %v230_v0 }
  0x69   : > { %1071 = vmatprep.mubr.msk.f32.mxu1 %vm324_vm0, %v230_v0 }
  0x6b   : > { %1032 = vmatmul.mubr.msk.f32.gmra.mrb[6].mxu0 %vm324_vm0, %v230_v0 }
  0x6c   : > { %1072 = vmatmul.mubr.msk.f32.gmra.mrb[6].mxu1 %vm324_vm0, %v230_v0 }
  0x91   : > { %v307_v6 = vpop.permute.xlu0 %306  ;;  %v317_v47 = vpop.permute.xlu1 %316 }
  0x95   : > { %v312_v48 = vpop.permute.xlu0 %311  ;;  %v322_v53 = vpop.permute.xlu1 %321 }
  0x99   : > { %v726_v3 = vpop.permute.xlu0 %725  ;;  %v731_v12 = vpop.permute.xlu1 %730 }
  0x9d   : > { %v736_v32 = vpop.permute.xlu0 %735 }
 0x132   : > { %v595_v49 = vpop.f32.mrb[0].mxu0 }
 0x133   : > { %v596_v50 = vadd.f32 %v595_v49, %v307_v6  ;;  %v684_v51 = vpop.f32.mrb[0].mxu1  ;;  %v597_v52 = vpop.f32.mrb[1].mxu0 }
 0x134   : > { %v685_v54 = vadd.f32 %v684_v51, %v307_v6  ;;  %v598_v55 = vadd.f32 %v597_v52, %v307_v6  ;;  %v686_v56 = vpop.f32.mrb[1].mxu1  ;;  %v741_v51 = vpop.permute.xlu1 %740 }
 0x135   : > { %v707_v57 = vmax.f32 %v596_v50, 0.0  ;;  %v687_v58 = vadd.f32 %v686_v56, %v307_v6 }
 0x136   : > { %v709_v59 = vmax.f32 %v685_v54, 0.0  ;;  %v708_v60 = vmax.f32 %v598_v55, 0.0  ;;  %v601_v61 = vpop.f32.mrb[2].mxu0 }
 0x137   : > { %v710_v62 = vmax.f32 %v687_v58, 0.0  ;;  %v602_v63 = vadd.f32 %v601_v61, %v312_v48  ;;  %v690_v1 = vpop.f32.mrb[2].mxu1  ;;  %v603_v2 = vpop.f32.mrb[3].mxu0  ;;  %v743_v8 = vmul.f32 %v726_v3, %v707_v57 }
 0x138   : > { %v691_v4 = vadd.f32 %v690_v1, %v312_v48  ;;  %v604_v5 = vadd.f32 %v603_v2, %v312_v48  ;;  %v692_v7 = vpop.f32.mrb[3].mxu1  ;;  %v745_v11 = vmul.f32 %v726_v3, %v709_v59  ;;  %v744_v13 = vmul.f32 %v726_v3, %v708_v60 }
 0x139   : > { %v711_v9 = vmax.f32 %v602_v63, 0.0  ;;  %v693_v10 = vadd.f32 %v692_v7, %v312_v48  ;;  %v746_v17 = vmul.f32 %v726_v3, %v710_v62 }
 0x13a   : > { %v713_v14 = vmax.f32 %v691_v4, 0.0  ;;  %v712_v15 = vmax.f32 %v604_v5, 0.0  ;;  %v607_v16 = vpop.f32.mrb[4].mxu0 }
 0x13b   : > { %v747_v18 = vmul.f32 %v731_v12, %v711_v9  ;;  %v714_v19 = vmax.f32 %v693_v10, 0.0  ;;  %v608_v20 = vadd.f32 %v607_v16, %v317_v47  ;;  %v696_v21 = vpop.f32.mrb[4].mxu1  ;;  %v609_v22 = vpop.f32.mrb[5].mxu0 }
 0x13c   : > { %v749_v23 = vmul.f32 %v731_v12, %v713_v14  ;;  %v748_v24 = vmul.f32 %v731_v12, %v712_v15  ;;  %v697_v25 = vadd.f32 %v696_v21, %v317_v47  ;;  %v610_v26 = vadd.f32 %v609_v22, %v317_v47  ;;  %v698_v27 = vpop.f32.mrb[5].mxu1 }
 0x13d   : > { %v759_v28 = vadd.f32 %v747_v18, %v743_v8  ;;  %v750_v29 = vmul.f32 %v731_v12, %v714_v19  ;;  %v715_v30 = vmax.f32 %v608_v20, 0.0  ;;  %v699_v31 = vadd.f32 %v698_v27, %v317_v47 }
 0x13e   : > { %v777_v33 = vadd.f32 %v749_v23, %v745_v11  ;;  %v768_v34 = vadd.f32 %v748_v24, %v744_v13  ;;  %v717_v35 = vmax.f32 %v697_v25, 0.0  ;;  %v716_v36 = vmax.f32 %v610_v26, 0.0  ;;  %v613_v37 = vpop.f32.mrb[6].mxu0 }
 0x13f   : > { %v786_v38 = vadd.f32 %v750_v29, %v746_v17  ;;  %v751_v39 = vmul.f32 %v736_v32, %v715_v30  ;;  %v718_v40 = vmax.f32 %v699_v31, 0.0  ;;  %v614_v41 = vadd.f32 %v613_v37, %v322_v53  ;;  %v702_v42 = vpop.f32.mrb[6].mxu1  ;;  %v615_v43 = vpop.f32.mrb[7].mxu0 }
 0x140   : > { %v753_v44 = vmul.f32 %v736_v32, %v717_v35  ;;  %v752_v45 = vmul.f32 %v736_v32, %v716_v36  ;;  %v703_v46 = vadd.f32 %v702_v42, %v322_v53  ;;  %v616_v0 = vadd.f32 %v615_v43, %v322_v53  ;;  %v704_v6 = vpop.f32.mrb[7].mxu1 }
 0x141   : > { %v760_v48 = vadd.f32 %v759_v28, %v751_v39  ;;  %v754_v49 = vmul.f32 %v736_v32, %v718_v40  ;;  %v719_v47 = vmax.f32 %v614_v41, 0.0  ;;  %v705_v50 = vadd.f32 %v704_v6, %v322_v53 }
 0x142   : > { %v778_v52 = vadd.f32 %v777_v33, %v753_v44  ;;  %v769_v54 = vadd.f32 %v768_v34, %v752_v45  ;;  %v721_v55 = vmax.f32 %v703_v46, 0.0  ;;  %v720_v56 = vmax.f32 %v616_v0, 0.0 }
 0x143   : > { %v787_v57 = vadd.f32 %v786_v38, %v754_v49  ;;  %v755_v58 = vmul.f32 %v741_v51, %v719_v47  ;;  %v722_v59 = vmax.f32 %v705_v50, 0.0  ;;  %v1277_v15 = vmov 1966171168  }
 0x144   : > { %v757_v60 = vmul.f32 %v741_v51, %v721_v55  ;;  %v756_v61 = vmul.f32 %v741_v51, %v720_v56  ;;  %v807_v16 = vunpack.c.l.s4 %v1277_v15  ;;  %v809_v17 = vlaneseq }
 0x145   : > { %v761_v62 = vadd.f32 %v760_v48, %v755_v58  ;;  %v758_v63 = vmul.f32 %v741_v51, %v722_v59  ;;  %v795_v23 = vstv %s239_s19 }
 0x146   : > { %v779_v1 = vadd.f32 %v778_v52, %v757_v60  ;;  %v770_v2 = vadd.f32 %v769_v54, %v756_v61  ;;  %v808_v27 = vunpack.c.0.s8 %v807_v16  ;;  %v810_v28 = vshrl.u32 %v809_v17, 7 }
 0x147   : > { %v762_v3 = vrot.slane %v761_v62, 4  ;;  %v788_v4 = vadd.f32 %v787_v57, %v758_v63  ;;  %vm831_vm2 = vcmp.lt.s32.totalorder %v809_v17, 512 }
 0x148   : > { %v780_v5 = vrot.slane %v779_v1, 4  ;;  %v771_v7 = vrot.slane %v770_v2, 4  ;;  %v811_v37 = vsub.s32 %v808_v27, %v810_v28 }
 0x149   : > { %v763_v53 = vadd.f32 %v762_v3, %v761_v62  ;;  %v789_v8 = vrot.slane %v788_v4, 4 }
 0x14a   : > { %v781_v9 = vadd.f32 %v780_v5, %v779_v1  ;;  %v772_v10 = vadd.f32 %v771_v7, %v770_v2 }
 0x14b   : > { %v764_v11 = vrot.slane %v763_v53, 2  ;;  %v790_v12 = vadd.f32 %v789_v8, %v788_v4 }
 0x14c   : > { %v782_v13 = vrot.slane %v781_v9, 2  ;;  %v773_v14 = vrot.slane %v772_v10, 2 }
 0x14d   : > { %v765_v18 = vadd.f32 %v764_v11, %v763_v53  ;;  %v791_v19 = vrot.slane %v790_v12, 2 }
 0x14e   : > { %v783_v20 = vadd.f32 %v782_v13, %v781_v9  ;;  %v774_v21 = vadd.f32 %v773_v14, %v772_v10 }
 0x14f   : > { %v766_v22 = vrot.slane %v765_v18, 1  ;;  %v792_v24 = vadd.f32 %v791_v19, %v790_v12 }
 0x150   : > { %v784_v25 = vrot.slane %v783_v20, 1  ;;  %v775_v26 = vrot.slane %v774_v21, 1 }
 0x151   : > { %v767_v29 = vadd.f32 %v766_v22, %v765_v18  ;;  %v793_v30 = vrot.slane %v792_v24, 1 }
 0x152   : > { %v785_v31 = vadd.f32 %v784_v25, %v783_v20  ;;  %v776_v32 = vadd.f32 %v775_v26, %v774_v21 }
 0x153   : > { %v796_v33 = vadd.f32 %v795_v23, %v767_v29  ;;  %v794_v34 = vadd.f32 %v793_v30, %v792_v24 }
 0x154   : > { %v798_v35 = vadd.f32 %v795_v23, %v785_v31  ;;  %v797_v36 = vadd.f32 %v795_v23, %v776_v32 }
 0x155   : > { %v799_v38 = vadd.f32 %v795_v23, %v794_v34 }
 0x156   : > { %v804_v39 = vcombine.low %v796_v33, %v797_v36 }
 0x157   : > { %v805_v40 = vcombine.low %v798_v35, %v799_v38 }
 0x158   : > { %v812_v41 = vrot.slane %v804_v39, %v811_v37 }
 0x159   : > { %v819_v42 = vrot.slane %v805_v40, %v811_v37 }
 0x15b   : > { %v820_v43 = vcombine.low %v812_v41, %v819_v42 }
 0x15d   : > { %v827_v44 = vrot.slane %v820_v43, %v811_v37 }
 0x15f   : > { %833 = vst.msk [vmem:[%s219_s26] sm:$0xf] %vm831_vm2, %v827_v44 }
 0x160   : > { %1225 = shalt.err (!%p1222_p3)
}
 0x161   : > { %s1226_s6 = scalar_lea.hbm %s1563_s9, 64  ;;  %s1230_s17 = scalar_lea.hbm %s1610_s5, 128 }
 0x162   : > { %p1227_p4 = scmp.ne.s32.totalorder %s1563_s9, %s1226_s6  ;;  %p1231_p9 = scmp.lt.u32.totalorder %s1563_s9, %s1610_s5 }
 0x163   : > { %p1232_p10 = scmp.lt.u32.totalorder %s1230_s17, %s1226_s6  ;;  %p1234_p12 = scmp.lt.u32.totalorder %s1226_s6, %s1563_s9 }
 0x164   : > { %p1228_p7 = pnand %p1227_p4, %p1347_p5 }
 0x165   : > { %p1233_p11 = por %p1232_p10, %p1231_p9 }
 0x166   : > { %p1229_p8 = pneg %p1228_p7 }
 0x167   : > { %p1235_p13 = por %p1234_p12, %p1233_p11 }
 0x169   : > { %p1236_p0 = pnand %p1235_p13, %p1229_p8 }
 0x16b   : > { %1239 = shalt.err (!%p1236_p0)
}
 0x16c   : > { %1169 = dma.vmem_to_hbm [thread:$0]  (%p1347_p5), %s1565_s27, 64, %s1563_s9, %s835_s10  }
 0x16d PF: > { %p1175_p1 = scmp.ge.s32.totalorder %s1274_s23, 2  ;;  %s861_s4 = sand.u32 1, %s1262_s20  }
 0x16e   : > { %s862_s24 = scalar_lea.sflag [#allocation4], %s861_s4 }
 0x16f   : > { %p1172_p2 = pnand %p1175_p1, %p1351_p6 }
 0x171   : > { %1257 = dma.done.wait (!%p1172_p2), %s862_s24, 64  }
 0x172   : > { %1259 = vsyncadd (!%p1172_p2), %s862_s24, 4294967232  ;;  %p16_p3 = scmp.ge.s32.totalorder %s1335_s25, 4   ;;  %s1615_s20 = smov %s1266_s21 }
 0x173   : > { %s1616_s21 = smov %s1270_s22  ;;  %s1617_s22 = smov %s1345_s28 }
 0x174   : > { %s1618_s23 = smov %s1335_s25  ;;  %18 = sbr.rel (!%p16_p3) target bundleno = 5 (0x5), region = 75 }
 0x17b   :  { %867 = vsyncpa [#allocation4], 1 }
 0x17c   :  { %869 = vsyncpa [#allocation4 + $0x1], 1 }

</bundles_post_ra>
